<compile_context>
chip_gen: v6e
topology: v6e:2x2x1
jax: 0.10.0
libtpu: 0.0.40
codegen_flags: <defaults>
</compile_context>

<pallas_src>
import functools
import math

import jax
import jax.numpy as jnp
from jax import lax
from jax.experimental import pallas as pl
from jax.experimental.pallas import tpu as pltpu

EPS = 1e-6            # config.eps
INV_SQRT2 = 0.7071067811865476


def _layernorm(v, gamma, beta):
    mu = jnp.mean(v, axis=-1, keepdims=True)
    var = jnp.mean(jnp.square(v - mu), axis=-1, keepdims=True)
    return (v - mu) * lax.rsqrt(var + EPS) * gamma + beta


def _gelu_exact(v):
    # nn.GELU() default = exact erf formulation (kept to preserve semantics).
    return 0.5 * v * (1.0 + lax.erf(v * INV_SQRT2))


def encoder_block_kernel(num_heads, mlp_chunk,
                         x_ref, ln_g_ref, ln_b_ref,
                         wqkv_ref, bqkv_ref,
                         wo_ref, bo_ref,
                         w1_ref, b1_ref, w2_ref, b2_ref,
                         out_ref, attn_ref=None):
    Bb, S, D = x_ref.shape
    hd = D // num_heads
    M = w1_ref.shape[1]
    N = Bb * S

    # Residual stream kept in f32.
    x = x_ref[...].astype(jnp.float32).reshape(N, D)
    gamma = ln_g_ref[0]                # (D,)
    beta = ln_b_ref[0]

    # ---- sub-layer 1: shared LayerNorm -> multi-head attention -> residual ----
    h = _layernorm(x, gamma, beta).astype(jnp.bfloat16)

    # Fused QKV projection: one big bf16 MXU matmul, f32 accumulate.
    # The 1/sqrt(hd) score scale is already folded into Wq / bq on the host.
    qkv = jnp.dot(h, wqkv_ref[...],
                  preferred_element_type=jnp.float32) + bqkv_ref[0]   # (N, 3D)
    qkv = qkv.reshape(Bb, S, 3 * D)
    q = qkv[:, :, 0 * D:1 * D].astype(jnp.bfloat16)
    k = qkv[:, :, 1 * D:2 * D].astype(jnp.bfloat16)
    v = qkv[:, :, 2 * D:3 * D].astype(jnp.bfloat16)

    probs = []
    ctxs = []
    for hi in range(num_heads):              # static head loop (H small)
        sl = slice(hi * hd, (hi + 1) * hd)
        s = jnp.einsum("bqd,bkd->bqk", q[:, :, sl], k[:, :, sl],
                       preferred_element_type=jnp.float32)            # (Bb,S,S)
        s = s - jnp.max(s, axis=-1, keepdims=True)
        p = jnp.exp(s)
        # Exact reciprocal: stored attention rows sum to 1 (review fix).
        p = p * pl.reciprocal(jnp.sum(p, axis=-1, keepdims=True))
        probs.append(p)
        ctxs.append(jnp.einsum("bqk,bkd->bqd", p.astype(jnp.bfloat16),
                               v[:, :, sl],
                               preferred_element_type=jnp.float32))    # (Bb,S,hd)

    if attn_ref is not None:
        # Single contiguous store of all heads (instead of H strided stores).
        # TODO(synk): pad the last dim to a 128-multiple for fully unmasked
        # vst on v5e when S is not lane-aligned.
        attn_ref[...] = jnp.stack(probs, axis=1).astype(attn_ref.dtype)

    # Collapse the per-head output projection into ONE (N,D) @ (D,D) matmul:
    # concatenated head contexts match the row ordering of the original Wo.
    ctx = jnp.concatenate(ctxs, axis=-1).reshape(N, D).astype(jnp.bfloat16)
    x1 = x + jnp.dot(ctx, wo_ref[...],
                     preferred_element_type=jnp.float32) + bo_ref[0]

    # ---- sub-layer 2: shared LayerNorm -> MLP -> residual ----
    # Chunked over the hidden dim M so the full f32 (N, M) pre-GELU activation
    # never materializes.
    h2 = _layernorm(x1, gamma, beta).astype(jnp.bfloat16)
    n_chunks = M // mlp_chunk
    if n_chunks == 1:
        g = jnp.dot(h2, w1_ref[...], preferred_element_type=jnp.float32) + b1_ref[0]
        y = jnp.dot(_gelu_exact(g).astype(jnp.bfloat16), w2_ref[...],
                    preferred_element_type=jnp.float32)
    else:
        def mlp_body(c, y):
            off = pl.multiple_of(c * mlp_chunk, mlp_chunk)
            g = jnp.dot(h2, w1_ref[:, pl.ds(off, mlp_chunk)],
                        preferred_element_type=jnp.float32)
            g = g + b1_ref[:, pl.ds(off, mlp_chunk)]
            g = _gelu_exact(g).astype(jnp.bfloat16)
            return y + jnp.dot(g, w2_ref[pl.ds(off, mlp_chunk), :],
                               preferred_element_type=jnp.float32)
        y = lax.fori_loop(0, n_chunks, mlp_body, jnp.zeros((N, D), jnp.float32))

    out_ref[...] = (x1 + y + b2_ref[0]).reshape(Bb, S, D).astype(out_ref.dtype)


def _vmem_capacity_bytes():
    """Physical VMEM per TensorCore; conservative 64 MiB fallback."""
    try:
        info = pltpu.get_tpu_info()
        for name in ("vmem_capacity_bytes", "vmem_bytes", "vmem_size_bytes"):
            val = getattr(info, name, None)
            if val:
                return int(val)
    except Exception:
        pass
    return 64 << 20


def _pick_mlp_chunk(M):
    if M <= 1024:
        return M
    for c in (1024, 896, 768, 640, 512, 384, 256, 128):
        if M % c == 0:
            return c
    return M


def _estimate_vmem_bytes(block_b, S, D, H, M, mlp_chunk,
                         x_itemsize, attn_itemsize, return_attn):
    """Block footprint INCLUDING in-kernel f32 temporaries (review fix)."""
    N = block_b * S
    BF, F4 = 2, 4
    weights = (D * 3 * D + D * D + D * M + M * D) * BF   # bf16, single copy
    biases = (2 * D + 3 * D + D + M + D) * F4
    io = 2 * 2 * block_b * S * D * x_itemsize             # x in + out, double-buffered
    if return_attn:
        io += 2 * block_b * H * S * S * attn_itemsize
    temps = (N * 3 * D * F4                                # qkv f32
             + 5 * N * D * F4                              # x, x1, ctx, attn_out, y f32
             + 4 * N * D * BF                              # h / q,k,v / ctx bf16 copies
             + 2 * block_b * H * S * S * F4                # scores + probs f32
             + N * mlp_chunk * (F4 + BF))                  # pre-/post-GELU chunk
    return weights + biases + io + temps + (4 << 20)       # compiler scratch headroom


def _pick_block_b(B, budget, vmem_cap, est_fn):
    small_vmem = vmem_cap <= (64 << 20)      # v7x-class part (2 TCs, 64 MiB each)
    best = 1
    for cand in range(min(B, 8), 0, -1):
        if B % cand != 0:
            continue
        if small_vmem and B >= 2 and (B // cand) < 2:
            continue          # keep >=2 grid steps so "parallel" shards across 2 TCs
        if est_fn(cand) <= budget:
            best = cand
            break
    return best


def vit_encoder_block(x, params, num_heads, *, block_b=None,
                      attn_dtype=jnp.bfloat16, return_attn=True):
    B, S, D = x.shape
    hd = D // num_heads
    M = params["w1"].shape[1]
    cdt = jnp.bfloat16      # MXU operand dtype (f32 accumulation in-kernel)

    # Host-side weight packing; fold 1/sqrt(hd) into the q columns.
    scale = 1.0 / math.sqrt(hd)
    wqkv = jnp.concatenate([params["wq"] * scale, params["wk"], params["wv"]],
                           axis=1).astype(cdt)                            # (D,3D)
    bqkv = jnp.concatenate([params["bq"] * scale, params["bk"], params["bv"]],
                           axis=1).astype(jnp.float32)                    # (1,3D)
    wo = params["wo"].astype(cdt)
    w1 = params["w1"].astype(cdt)
    w2 = params["w2"].astype(cdt)

    mlp_chunk = _pick_mlp_chunk(M)

    # Per-generation sizing from the true block footprint.
    vmem_cap = _vmem_capacity_bytes()
    budget = int(vmem_cap * 0.85)            # leave headroom for compiler scratch
    x_isz = jnp.dtype(x.dtype).itemsize
    attn_isz = jnp.dtype(attn_dtype).itemsize if return_attn else 0
    est = lambda bb: _estimate_vmem_bytes(bb, S, D, num_heads, M, mlp_chunk,
                                          x_isz, attn_isz, return_attn)
    if block_b is None:
        block_b = _pick_block_b(B, budget, vmem_cap, est)
    assert B % block_b == 0
    grid_b = B // block_b
    vmem_limit = int(min(max(est(block_b), 32 << 20), budget))

    # Grid-invariant weights & biases: whole-array VMEM residency, single copy
    # (no double-buffering of operands whose index map never changes).
    wspec = pl.BlockSpec(memory_space=pltpu.MemorySpace.VMEM)

    in_specs = [pl.BlockSpec((block_b, S, D), lambda b: (b, 0, 0))] + [wspec] * 10

    out_specs = [pl.BlockSpec((block_b, S, D), lambda b: (b, 0, 0))]
    out_shape = [jax.ShapeDtypeStruct((B, S, D), x.dtype)]
    if return_attn:
        out_specs.append(pl.BlockSpec((block_b, num_heads, S, S),
                                      lambda b: (b, 0, 0, 0)))
        out_shape.append(jax.ShapeDtypeStruct((B, num_heads, S, S), attn_dtype))

    grid_spec = pltpu.PrefetchScalarGridSpec(
        num_scalar_prefetch=0,
        grid=(grid_b,),
        in_specs=in_specs,
        out_specs=out_specs,
    )
    fn = pl.pallas_call(
        functools.partial(encoder_block_kernel, num_heads, mlp_chunk),
        out_shape=out_shape,
        grid_spec=grid_spec,
        compiler_params=pltpu.CompilerParams(
            dimension_semantics=("parallel",),      # batch blocks -> 2 TCs on v7x
            vmem_limit_bytes=vmem_limit),
    )
    res = fn(x,
             params["ln_g"], params["ln_b"],
             wqkv, bqkv, wo, params["bo"],
             w1, params["b1"], w2, params["b2"])
    if return_attn:
        return res[0], res[1]
    return res[0], None


def reference(x, p, num_heads):
    """Pure-JAX f32 reference of the same forward pass (sanity check)."""
    B, S, D = x.shape
    hd = D // num_heads

    def ln(v):
        mu = v.mean(-1, keepdims=True)
        var = ((v - mu) ** 2).mean(-1, keepdims=True)
        return (v - mu) * lax.rsqrt(var + EPS) * p["ln_g"][0] + p["ln_b"][0]

    h = ln(x)
    q = h @ p["wq"] + p["bq"][0]
    k = h @ p["wk"] + p["bk"][0]
    v = h @ p["wv"] + p["bv"][0]
    qh = q.reshape(B, S, num_heads, hd).transpose(0, 2, 1, 3)
    kh = k.reshape(B, S, num_heads, hd).transpose(0, 2, 1, 3)
    vh = v.reshape(B, S, num_heads, hd).transpose(0, 2, 1, 3)
    scores = jnp.einsum("bhqd,bhkd->bhqk", qh, kh) * (1.0 / float(hd) ** 0.5)
    attn = jax.nn.softmax(scores, axis=-1)
    ctx = jnp.einsum("bhqk,bhkd->bhqd", attn, vh)
    ctx = ctx.transpose(0, 2, 1, 3).reshape(B, S, D)
    x1 = x + ctx @ p["wo"] + p["bo"][0]
    h2 = ln(x1)
    g = h2 @ p["w1"] + p["b1"][0]
    g = 0.5 * g * (1.0 + lax.erf(g * INV_SQRT2))
    out = x1 + g @ p["w2"] + p["b2"][0]
    return out, attn


def init_params(key, D, M):
    ks = jax.random.split(key, 6)
    w = lambda k, s: (jax.random.normal(k, s, jnp.float32) * 0.02)
    return {
        "ln_g": jnp.ones((1, D), jnp.float32),
        "ln_b": jnp.zeros((1, D), jnp.float32),
        "wq": w(ks[0], (D, D)), "bq": jnp.zeros((1, D), jnp.float32),
        "wk": w(ks[1], (D, D)), "bk": jnp.zeros((1, D), jnp.float32),
        "wv": w(ks[2], (D, D)), "bv": jnp.zeros((1, D), jnp.float32),
        "wo": w(ks[3], (D, D)), "bo": jnp.zeros((1, D), jnp.float32),
        "w1": w(ks[4], (D, M)), "b1": jnp.zeros((1, M), jnp.float32),
        "w2": w(ks[5], (M, D)), "b2": jnp.zeros((1, D), jnp.float32),
    }


if __name__ == "__main__":
    B, S, D, H, M = 2, 8, 32, 4, 64   # batch, seq, embedding_dim, heads, mlp_dim
    key = jax.random.PRNGKey(0)
    k_x, k_p = jax.random.split(key)
    x = jax.random.normal(k_x, (B, S, D), jnp.float32)
    params = init_params(k_p, D, M)

    out, attn = vit_encoder_block(x, params, H)
    out = jax.block_until_ready(out)
    attn = jax.block_until_ready(attn)

    ref_out, ref_attn = reference(x, params, H)
    assert out.shape == (B, S, D) and attn.shape == (B, H, S, S)
    # bf16 MXU operands (f32 accumulate) => loosen tolerance vs the f32 reference.
    assert bool(jnp.allclose(out, ref_out, atol=2e-2, rtol=2e-2))
    assert bool(jnp.allclose(attn.astype(jnp.float32), ref_attn, atol=1e-2, rtol=1e-2))
    print("KERNEL_OK")
</pallas_src>

<mosaic_0001>
module attributes {stable_mosaic.version = 11 : i64} {
  func.func @encoder_block_kernel(%arg0: i32, %arg1: memref<1x8x32xf32, #tpu.memory_space<vmem>>, %arg2: memref<1x32xf32, #tpu.memory_space<vmem>>, %arg3: memref<1x32xf32, #tpu.memory_space<vmem>>, %arg4: memref<32x96xbf16, #tpu.memory_space<vmem>>, %arg5: memref<1x96xf32, #tpu.memory_space<vmem>>, %arg6: memref<32x32xbf16, #tpu.memory_space<vmem>>, %arg7: memref<1x32xf32, #tpu.memory_space<vmem>>, %arg8: memref<32x64xbf16, #tpu.memory_space<vmem>>, %arg9: memref<1x64xf32, #tpu.memory_space<vmem>>, %arg10: memref<64x32xbf16, #tpu.memory_space<vmem>>, %arg11: memref<1x32xf32, #tpu.memory_space<vmem>>, %arg12: memref<1x8x32xf32, #tpu.memory_space<vmem>>, %arg13: memref<1x4x8x8xbf16, #tpu.memory_space<vmem>>) attributes {dimension_semantics = [#tpu.dimension_semantics<parallel>], iteration_bounds = array<i64: 2>, scalar_prefetch = 0 : i64, scratch_operands = 0 : i64, tpu.core_type = #tpu.core_type<tc>, window_params = [{transform_indices = @transform_0, window_bounds = array<i64: 1, 8, 32>}, {pipeline_mode = #tpu.pipeline_mode<synchronous>, transform_indices = @transform_1, window_bounds = array<i64: 1, 32>}, {pipeline_mode = #tpu.pipeline_mode<synchronous>, transform_indices = @transform_2, window_bounds = array<i64: 1, 32>}, {pipeline_mode = #tpu.pipeline_mode<synchronous>, transform_indices = @transform_3, window_bounds = array<i64: 32, 96>}, {pipeline_mode = #tpu.pipeline_mode<synchronous>, transform_indices = @transform_4, window_bounds = array<i64: 1, 96>}, {pipeline_mode = #tpu.pipeline_mode<synchronous>, transform_indices = @transform_5, window_bounds = array<i64: 32, 32>}, {pipeline_mode = #tpu.pipeline_mode<synchronous>, transform_indices = @transform_6, window_bounds = array<i64: 1, 32>}, {pipeline_mode = #tpu.pipeline_mode<synchronous>, transform_indices = @transform_7, window_bounds = array<i64: 32, 64>}, {pipeline_mode = #tpu.pipeline_mode<synchronous>, transform_indices = @transform_8, window_bounds = array<i64: 1, 64>}, {pipeline_mode = #tpu.pipeline_mode<synchronous>, transform_indices = @transform_9, window_bounds = array<i64: 64, 32>}, {pipeline_mode = #tpu.pipeline_mode<synchronous>, transform_indices = @transform_10, window_bounds = array<i64: 1, 32>}, {transform_indices = @transform_11, window_bounds = array<i64: 1, 8, 32>}, {transform_indices = @transform_12, window_bounds = array<i64: 1, 4, 8, 8>}]} {
    %c0 = arith.constant 0 : index
    %c0_0 = arith.constant 0 : index
    %c0_1 = arith.constant 0 : index
    %0 = vector.load %arg1[%c0, %c0_0, %c0_1] : memref<1x8x32xf32, #tpu.memory_space<vmem>>, vector<1x8x32xf32>
    %1 = vector.shape_cast %0 : vector<1x8x32xf32> to vector<8x32xf32>
    %c0_2 = arith.constant 0 : index
    %c0_3 = arith.constant 0 : index
    %2 = vector.load %arg2[%c0_2, %c0_3] : memref<1x32xf32, #tpu.memory_space<vmem>>, vector<1x32xf32>
    %3 = vector.shape_cast %2 : vector<1x32xf32> to vector<32xf32>
    %c0_4 = arith.constant 0 : index
    %c0_5 = arith.constant 0 : index
    %4 = vector.load %arg3[%c0_4, %c0_5] : memref<1x32xf32, #tpu.memory_space<vmem>>, vector<1x32xf32>
    %5 = vector.shape_cast %4 : vector<1x32xf32> to vector<32xf32>
    %cst = arith.constant dense<0.000000e+00> : vector<8xf32>
    %6 = vector.multi_reduction <add>, %1, %cst [1] : vector<8x32xf32> to vector<8xf32>
    %7 = vector.shape_cast %6 : vector<8xf32> to vector<8x1xf32>
    %cst_6 = arith.constant 3.200000e+01 : f32
    %8 = vector.broadcast %cst_6 : f32 to vector<8x1xf32>
    %9 = arith.divf %7, %8 : vector<8x1xf32>
    %10 = vector.broadcast %9 : vector<8x1xf32> to vector<8x32xf32>
    %11 = arith.subf %1, %10 : vector<8x32xf32>
    %12 = arith.mulf %11, %11 : vector<8x32xf32>
    %cst_7 = arith.constant dense<0.000000e+00> : vector<8xf32>
    %13 = vector.multi_reduction <add>, %12, %cst_7 [1] : vector<8x32xf32> to vector<8xf32>
    %14 = vector.shape_cast %13 : vector<8xf32> to vector<8x1xf32>
    %cst_8 = arith.constant 3.200000e+01 : f32
    %15 = vector.broadcast %cst_8 : f32 to vector<8x1xf32>
    %16 = arith.divf %14, %15 : vector<8x1xf32>
    %17 = vector.broadcast %9 : vector<8x1xf32> to vector<8x32xf32>
    %18 = arith.subf %1, %17 : vector<8x32xf32>
    %cst_9 = arith.constant 9.99999997E-7 : f32
    %19 = vector.broadcast %cst_9 : f32 to vector<8x1xf32>
    %20 = arith.addf %16, %19 : vector<8x1xf32>
    %21 = math.rsqrt %20 : vector<8x1xf32>
    %22 = vector.broadcast %21 : vector<8x1xf32> to vector<8x32xf32>
    %23 = arith.mulf %18, %22 : vector<8x32xf32>
    %24 = vector.shape_cast %3 : vector<32xf32> to vector<1x32xf32>
    %25 = vector.broadcast %24 : vector<1x32xf32> to vector<8x32xf32>
    %26 = arith.mulf %23, %25 : vector<8x32xf32>
    %27 = vector.shape_cast %5 : vector<32xf32> to vector<1x32xf32>
    %28 = vector.broadcast %27 : vector<1x32xf32> to vector<8x32xf32>
    %29 = arith.addf %26, %28 : vector<8x32xf32>
    %30 = arith.truncf %29 : vector<8x32xf32> to vector<8x32xbf16>
    %c0_10 = arith.constant 0 : index
    %c0_11 = arith.constant 0 : index
    %31 = vector.load %arg4[%c0_10, %c0_11] : memref<32x96xbf16, #tpu.memory_space<vmem>>, vector<32x96xbf16>
    %cst_12 = arith.constant dense<0.000000e+00> : vector<8x96xf32>
    %32 = tpu.matmul %30, %31, %cst_12 {dimension_numbers = #tpu.dot_dimension_numbers<[1], [0], [0], [1], [0, 0, 1, 1], [], []>} : vector<8x32xbf16>, vector<32x96xbf16>, vector<8x96xf32> -> vector<8x96xf32>
    %c0_13 = arith.constant 0 : index
    %c0_14 = arith.constant 0 : index
    %33 = vector.load %arg5[%c0_13, %c0_14] : memref<1x96xf32, #tpu.memory_space<vmem>>, vector<1x96xf32>
    %34 = vector.shape_cast %33 : vector<1x96xf32> to vector<96xf32>
    %35 = vector.shape_cast %34 : vector<96xf32> to vector<1x96xf32>
    %36 = vector.broadcast %35 : vector<1x96xf32> to vector<8x96xf32>
    %37 = arith.addf %32, %36 : vector<8x96xf32>
    %38 = vector.shape_cast %37 : vector<8x96xf32> to vector<1x8x96xf32>
    %39 = vector.extract_strided_slice %38 {offsets = [0, 0, 0], sizes = [1, 8, 32], strides = [1, 1, 1]} : vector<1x8x96xf32> to vector<1x8x32xf32>
    %40 = arith.truncf %39 : vector<1x8x32xf32> to vector<1x8x32xbf16>
    %41 = vector.extract_strided_slice %38 {offsets = [0, 0, 32], sizes = [1, 8, 32], strides = [1, 1, 1]} : vector<1x8x96xf32> to vector<1x8x32xf32>
    %42 = arith.truncf %41 : vector<1x8x32xf32> to vector<1x8x32xbf16>
    %43 = vector.extract_strided_slice %38 {offsets = [0, 0, 64], sizes = [1, 8, 32], strides = [1, 1, 1]} : vector<1x8x96xf32> to vector<1x8x32xf32>
    %44 = arith.truncf %43 : vector<1x8x32xf32> to vector<1x8x32xbf16>
    %45 = vector.extract_strided_slice %40 {offsets = [0, 0, 0], sizes = [1, 8, 8], strides = [1, 1, 1]} : vector<1x8x32xbf16> to vector<1x8x8xbf16>
    %46 = vector.extract_strided_slice %42 {offsets = [0, 0, 0], sizes = [1, 8, 8], strides = [1, 1, 1]} : vector<1x8x32xbf16> to vector<1x8x8xbf16>
    "tpu.trace_start"() <{level = 10 : i32, message = "bqd,bkd->bqk"}> : () -> ()
    %cst_15 = arith.constant dense<0.000000e+00> : vector<1x8x8xf32>
    %47 = tpu.matmul %45, %46, %cst_15 {dimension_numbers = #tpu.dot_dimension_numbers<[2], [2], [1], [1], [0, 0, 0, 1, 1, 1], [0], [0]>} : vector<1x8x8xbf16>, vector<1x8x8xbf16>, vector<1x8x8xf32> -> vector<1x8x8xf32>
    "tpu.trace_stop"() : () -> ()
    %cst_16 = arith.constant dense<0xFF800000> : vector<1x8xf32>
    %48 = vector.multi_reduction <maximumf>, %47, %cst_16 [2] : vector<1x8x8xf32> to vector<1x8xf32>
    %49 = vector.shape_cast %48 : vector<1x8xf32> to vector<1x8x1xf32>
    %50 = vector.broadcast %49 : vector<1x8x1xf32> to vector<1x8x8xf32>
    %51 = arith.subf %47, %50 : vector<1x8x8xf32>
    %52 = math.exp %51 : vector<1x8x8xf32>
    %cst_17 = arith.constant dense<0.000000e+00> : vector<1x8xf32>
    %53 = vector.multi_reduction <add>, %52, %cst_17 [2] : vector<1x8x8xf32> to vector<1x8xf32>
    %54 = vector.shape_cast %53 : vector<1x8xf32> to vector<1x8x1xf32>
    %55 = tpu.reciprocal %54 : vector<1x8x1xf32> -> vector<1x8x1xf32>
    %56 = vector.broadcast %55 : vector<1x8x1xf32> to vector<1x8x8xf32>
    %57 = arith.mulf %52, %56 : vector<1x8x8xf32>
    %58 = arith.truncf %57 : vector<1x8x8xf32> to vector<1x8x8xbf16>
    %59 = vector.extract_strided_slice %44 {offsets = [0, 0, 0], sizes = [1, 8, 8], strides = [1, 1, 1]} : vector<1x8x32xbf16> to vector<1x8x8xbf16>
    "tpu.trace_start"() <{level = 10 : i32, message = "bqk,bkd->bqd"}> : () -> ()
    %cst_18 = arith.constant dense<0.000000e+00> : vector<1x8x8xf32>
    %60 = tpu.matmul %58, %59, %cst_18 {dimension_numbers = #tpu.dot_dimension_numbers<[2], [1], [1], [2], [0, 0, 0, 1, 1, 2], [0], [0]>} : vector<1x8x8xbf16>, vector<1x8x8xbf16>, vector<1x8x8xf32> -> vector<1x8x8xf32>
    "tpu.trace_stop"() : () -> ()
    %61 = vector.extract_strided_slice %40 {offsets = [0, 0, 8], sizes = [1, 8, 8], strides = [1, 1, 1]} : vector<1x8x32xbf16> to vector<1x8x8xbf16>
    %62 = vector.extract_strided_slice %42 {offsets = [0, 0, 8], sizes = [1, 8, 8], strides = [1, 1, 1]} : vector<1x8x32xbf16> to vector<1x8x8xbf16>
    "tpu.trace_start"() <{level = 10 : i32, message = "bqd,bkd->bqk"}> : () -> ()
    %cst_19 = arith.constant dense<0.000000e+00> : vector<1x8x8xf32>
    %63 = tpu.matmul %61, %62, %cst_19 {dimension_numbers = #tpu.dot_dimension_numbers<[2], [2], [1], [1], [0, 0, 0, 1, 1, 1], [0], [0]>} : vector<1x8x8xbf16>, vector<1x8x8xbf16>, vector<1x8x8xf32> -> vector<1x8x8xf32>
    "tpu.trace_stop"() : () -> ()
    %cst_20 = arith.constant dense<0xFF800000> : vector<1x8xf32>
    %64 = vector.multi_reduction <maximumf>, %63, %cst_20 [2] : vector<1x8x8xf32> to vector<1x8xf32>
    %65 = vector.shape_cast %64 : vector<1x8xf32> to vector<1x8x1xf32>
    %66 = vector.broadcast %65 : vector<1x8x1xf32> to vector<1x8x8xf32>
    %67 = arith.subf %63, %66 : vector<1x8x8xf32>
    %68 = math.exp %67 : vector<1x8x8xf32>
    %cst_21 = arith.constant dense<0.000000e+00> : vector<1x8xf32>
    %69 = vector.multi_reduction <add>, %68, %cst_21 [2] : vector<1x8x8xf32> to vector<1x8xf32>
    %70 = vector.shape_cast %69 : vector<1x8xf32> to vector<1x8x1xf32>
    %71 = tpu.reciprocal %70 : vector<1x8x1xf32> -> vector<1x8x1xf32>
    %72 = vector.broadcast %71 : vector<1x8x1xf32> to vector<1x8x8xf32>
    %73 = arith.mulf %68, %72 : vector<1x8x8xf32>
    %74 = arith.truncf %73 : vector<1x8x8xf32> to vector<1x8x8xbf16>
    %75 = vector.extract_strided_slice %44 {offsets = [0, 0, 8], sizes = [1, 8, 8], strides = [1, 1, 1]} : vector<1x8x32xbf16> to vector<1x8x8xbf16>
    "tpu.trace_start"() <{level = 10 : i32, message = "bqk,bkd->bqd"}> : () -> ()
    %cst_22 = arith.constant dense<0.000000e+00> : vector<1x8x8xf32>
    %76 = tpu.matmul %74, %75, %cst_22 {dimension_numbers = #tpu.dot_dimension_numbers<[2], [1], [1], [2], [0, 0, 0, 1, 1, 2], [0], [0]>} : vector<1x8x8xbf16>, vector<1x8x8xbf16>, vector<1x8x8xf32> -> vector<1x8x8xf32>
    "tpu.trace_stop"() : () -> ()
    %77 = vector.extract_strided_slice %40 {offsets = [0, 0, 16], sizes = [1, 8, 8], strides = [1, 1, 1]} : vector<1x8x32xbf16> to vector<1x8x8xbf16>
    %78 = vector.extract_strided_slice %42 {offsets = [0, 0, 16], sizes = [1, 8, 8], strides = [1, 1, 1]} : vector<1x8x32xbf16> to vector<1x8x8xbf16>
    "tpu.trace_start"() <{level = 10 : i32, message = "bqd,bkd->bqk"}> : () -> ()
    %cst_23 = arith.constant dense<0.000000e+00> : vector<1x8x8xf32>
    %79 = tpu.matmul %77, %78, %cst_23 {dimension_numbers = #tpu.dot_dimension_numbers<[2], [2], [1], [1], [0, 0, 0, 1, 1, 1], [0], [0]>} : vector<1x8x8xbf16>, vector<1x8x8xbf16>, vector<1x8x8xf32> -> vector<1x8x8xf32>
    "tpu.trace_stop"() : () -> ()
    %cst_24 = arith.constant dense<0xFF800000> : vector<1x8xf32>
    %80 = vector.multi_reduction <maximumf>, %79, %cst_24 [2] : vector<1x8x8xf32> to vector<1x8xf32>
    %81 = vector.shape_cast %80 : vector<1x8xf32> to vector<1x8x1xf32>
    %82 = vector.broadcast %81 : vector<1x8x1xf32> to vector<1x8x8xf32>
    %83 = arith.subf %79, %82 : vector<1x8x8xf32>
    %84 = math.exp %83 : vector<1x8x8xf32>
    %cst_25 = arith.constant dense<0.000000e+00> : vector<1x8xf32>
    %85 = vector.multi_reduction <add>, %84, %cst_25 [2] : vector<1x8x8xf32> to vector<1x8xf32>
    %86 = vector.shape_cast %85 : vector<1x8xf32> to vector<1x8x1xf32>
    %87 = tpu.reciprocal %86 : vector<1x8x1xf32> -> vector<1x8x1xf32>
    %88 = vector.broadcast %87 : vector<1x8x1xf32> to vector<1x8x8xf32>
    %89 = arith.mulf %84, %88 : vector<1x8x8xf32>
    %90 = arith.truncf %89 : vector<1x8x8xf32> to vector<1x8x8xbf16>
    %91 = vector.extract_strided_slice %44 {offsets = [0, 0, 16], sizes = [1, 8, 8], strides = [1, 1, 1]} : vector<1x8x32xbf16> to vector<1x8x8xbf16>
    "tpu.trace_start"() <{level = 10 : i32, message = "bqk,bkd->bqd"}> : () -> ()
    %cst_26 = arith.constant dense<0.000000e+00> : vector<1x8x8xf32>
    %92 = tpu.matmul %90, %91, %cst_26 {dimension_numbers = #tpu.dot_dimension_numbers<[2], [1], [1], [2], [0, 0, 0, 1, 1, 2], [0], [0]>} : vector<1x8x8xbf16>, vector<1x8x8xbf16>, vector<1x8x8xf32> -> vector<1x8x8xf32>
    "tpu.trace_stop"() : () -> ()
    %93 = vector.extract_strided_slice %40 {offsets = [0, 0, 24], sizes = [1, 8, 8], strides = [1, 1, 1]} : vector<1x8x32xbf16> to vector<1x8x8xbf16>
    %94 = vector.extract_strided_slice %42 {offsets = [0, 0, 24], sizes = [1, 8, 8], strides = [1, 1, 1]} : vector<1x8x32xbf16> to vector<1x8x8xbf16>
    "tpu.trace_start"() <{level = 10 : i32, message = "bqd,bkd->bqk"}> : () -> ()
    %cst_27 = arith.constant dense<0.000000e+00> : vector<1x8x8xf32>
    %95 = tpu.matmul %93, %94, %cst_27 {dimension_numbers = #tpu.dot_dimension_numbers<[2], [2], [1], [1], [0, 0, 0, 1, 1, 1], [0], [0]>} : vector<1x8x8xbf16>, vector<1x8x8xbf16>, vector<1x8x8xf32> -> vector<1x8x8xf32>
    "tpu.trace_stop"() : () -> ()
    %cst_28 = arith.constant dense<0xFF800000> : vector<1x8xf32>
    %96 = vector.multi_reduction <maximumf>, %95, %cst_28 [2] : vector<1x8x8xf32> to vector<1x8xf32>
    %97 = vector.shape_cast %96 : vector<1x8xf32> to vector<1x8x1xf32>
    %98 = vector.broadcast %97 : vector<1x8x1xf32> to vector<1x8x8xf32>
    %99 = arith.subf %95, %98 : vector<1x8x8xf32>
    %100 = math.exp %99 : vector<1x8x8xf32>
    %cst_29 = arith.constant dense<0.000000e+00> : vector<1x8xf32>
    %101 = vector.multi_reduction <add>, %100, %cst_29 [2] : vector<1x8x8xf32> to vector<1x8xf32>
    %102 = vector.shape_cast %101 : vector<1x8xf32> to vector<1x8x1xf32>
    %103 = tpu.reciprocal %102 : vector<1x8x1xf32> -> vector<1x8x1xf32>
    %104 = vector.broadcast %103 : vector<1x8x1xf32> to vector<1x8x8xf32>
    %105 = arith.mulf %100, %104 : vector<1x8x8xf32>
    %106 = arith.truncf %105 : vector<1x8x8xf32> to vector<1x8x8xbf16>
    %107 = vector.extract_strided_slice %44 {offsets = [0, 0, 24], sizes = [1, 8, 8], strides = [1, 1, 1]} : vector<1x8x32xbf16> to vector<1x8x8xbf16>
    "tpu.trace_start"() <{level = 10 : i32, message = "bqk,bkd->bqd"}> : () -> ()
    %cst_30 = arith.constant dense<0.000000e+00> : vector<1x8x8xf32>
    %108 = tpu.matmul %106, %107, %cst_30 {dimension_numbers = #tpu.dot_dimension_numbers<[2], [1], [1], [2], [0, 0, 0, 1, 1, 2], [0], [0]>} : vector<1x8x8xbf16>, vector<1x8x8xbf16>, vector<1x8x8xf32> -> vector<1x8x8xf32>
    "tpu.trace_stop"() : () -> ()
    %109 = vector.shape_cast %57 : vector<1x8x8xf32> to vector<1x1x8x8xf32>
    %110 = vector.shape_cast %73 : vector<1x8x8xf32> to vector<1x1x8x8xf32>
    %111 = vector.shape_cast %89 : vector<1x8x8xf32> to vector<1x1x8x8xf32>
    %112 = vector.shape_cast %105 : vector<1x8x8xf32> to vector<1x1x8x8xf32>
    %113 = tpu.concatenate %109, %110, %111, %112 in 1 : vector<1x1x8x8xf32>, vector<1x1x8x8xf32>, vector<1x1x8x8xf32>, vector<1x1x8x8xf32> -> vector<1x4x8x8xf32>
    %114 = arith.truncf %113 : vector<1x4x8x8xf32> to vector<1x4x8x8xbf16>
    %c0_31 = arith.constant 0 : index
    %c0_32 = arith.constant 0 : index
    %c0_33 = arith.constant 0 : index
    %c0_34 = arith.constant 0 : index
    %115 = vector.load %arg13[%c0_31, %c0_32, %c0_33, %c0_34] : memref<1x4x8x8xbf16, #tpu.memory_space<vmem>>, vector<1x4x8x8xbf16>
    tpu.vector_store %arg13[%c0_31, %c0_32, %c0_33, %c0_34], %114 {strides = array<i32>} : memref<1x4x8x8xbf16, #tpu.memory_space<vmem>>, vector<1x4x8x8xbf16>,
    %116 = tpu.concatenate %60, %76, %92, %108 in 2 : vector<1x8x8xf32>, vector<1x8x8xf32>, vector<1x8x8xf32>, vector<1x8x8xf32> -> vector<1x8x32xf32>
    %117 = vector.shape_cast %116 : vector<1x8x32xf32> to vector<8x32xf32>
    %118 = arith.truncf %117 : vector<8x32xf32> to vector<8x32xbf16>
    %c0_35 = arith.constant 0 : index
    %c0_36 = arith.constant 0 : index
    %119 = vector.load %arg6[%c0_35, %c0_36] : memref<32x32xbf16, #tpu.memory_space<vmem>>, vector<32x32xbf16>
    %cst_37 = arith.constant dense<0.000000e+00> : vector<8x32xf32>
    %120 = tpu.matmul %118, %119, %cst_37 {dimension_numbers = #tpu.dot_dimension_numbers<[1], [0], [0], [1], [0, 0, 1, 1], [], []>} : vector<8x32xbf16>, vector<32x32xbf16>, vector<8x32xf32> -> vector<8x32xf32>
    %121 = arith.addf %1, %120 : vector<8x32xf32>
    %c0_38 = arith.constant 0 : index
    %c0_39 = arith.constant 0 : index
    %122 = vector.load %arg7[%c0_38, %c0_39] : memref<1x32xf32, #tpu.memory_space<vmem>>, vector<1x32xf32>
    %123 = vector.shape_cast %122 : vector<1x32xf32> to vector<32xf32>
    %124 = vector.shape_cast %123 : vector<32xf32> to vector<1x32xf32>
    %125 = vector.broadcast %124 : vector<1x32xf32> to vector<8x32xf32>
    %126 = arith.addf %121, %125 : vector<8x32xf32>
    %cst_40 = arith.constant dense<0.000000e+00> : vector<8xf32>
    %127 = vector.multi_reduction <add>, %126, %cst_40 [1] : vector<8x32xf32> to vector<8xf32>
    %128 = vector.shape_cast %127 : vector<8xf32> to vector<8x1xf32>
    %cst_41 = arith.constant 3.200000e+01 : f32
    %129 = vector.broadcast %cst_41 : f32 to vector<8x1xf32>
    %130 = arith.divf %128, %129 : vector<8x1xf32>
    %131 = vector.broadcast %130 : vector<8x1xf32> to vector<8x32xf32>
    %132 = arith.subf %126, %131 : vector<8x32xf32>
    %133 = arith.mulf %132, %132 : vector<8x32xf32>
    %cst_42 = arith.constant dense<0.000000e+00> : vector<8xf32>
    %134 = vector.multi_reduction <add>, %133, %cst_42 [1] : vector<8x32xf32> to vector<8xf32>
    %135 = vector.shape_cast %134 : vector<8xf32> to vector<8x1xf32>
    %cst_43 = arith.constant 3.200000e+01 : f32
    %136 = vector.broadcast %cst_43 : f32 to vector<8x1xf32>
    %137 = arith.divf %135, %136 : vector<8x1xf32>
    %138 = vector.broadcast %130 : vector<8x1xf32> to vector<8x32xf32>
    %139 = arith.subf %126, %138 : vector<8x32xf32>
    %cst_44 = arith.constant 9.99999997E-7 : f32
    %140 = vector.broadcast %cst_44 : f32 to vector<8x1xf32>
    %141 = arith.addf %137, %140 : vector<8x1xf32>
    %142 = math.rsqrt %141 : vector<8x1xf32>
    %143 = vector.broadcast %142 : vector<8x1xf32> to vector<8x32xf32>
    %144 = arith.mulf %139, %143 : vector<8x32xf32>
    %145 = vector.shape_cast %3 : vector<32xf32> to vector<1x32xf32>
    %146 = vector.broadcast %145 : vector<1x32xf32> to vector<8x32xf32>
    %147 = arith.mulf %144, %146 : vector<8x32xf32>
    %148 = vector.shape_cast %5 : vector<32xf32> to vector<1x32xf32>
    %149 = vector.broadcast %148 : vector<1x32xf32> to vector<8x32xf32>
    %150 = arith.addf %147, %149 : vector<8x32xf32>
    %151 = arith.truncf %150 : vector<8x32xf32> to vector<8x32xbf16>
    %c0_45 = arith.constant 0 : index
    %c0_46 = arith.constant 0 : index
    %152 = vector.load %arg8[%c0_45, %c0_46] : memref<32x64xbf16, #tpu.memory_space<vmem>>, vector<32x64xbf16>
    %cst_47 = arith.constant dense<0.000000e+00> : vector<8x64xf32>
    %153 = tpu.matmul %151, %152, %cst_47 {dimension_numbers = #tpu.dot_dimension_numbers<[1], [0], [0], [1], [0, 0, 1, 1], [], []>} : vector<8x32xbf16>, vector<32x64xbf16>, vector<8x64xf32> -> vector<8x64xf32>
    %c0_48 = arith.constant 0 : index
    %c0_49 = arith.constant 0 : index
    %154 = vector.load %arg9[%c0_48, %c0_49] : memref<1x64xf32, #tpu.memory_space<vmem>>, vector<1x64xf32>
    %155 = vector.shape_cast %154 : vector<1x64xf32> to vector<64xf32>
    %156 = vector.shape_cast %155 : vector<64xf32> to vector<1x64xf32>
    %157 = vector.broadcast %156 : vector<1x64xf32> to vector<8x64xf32>
    %158 = arith.addf %153, %157 : vector<8x64xf32>
    %cst_50 = arith.constant 5.000000e-01 : f32
    %159 = vector.broadcast %cst_50 : f32 to vector<8x64xf32>
    %160 = arith.mulf %159, %158 : vector<8x64xf32>
    %cst_51 = arith.constant 0.707106769 : f32
    %161 = vector.broadcast %cst_51 : f32 to vector<8x64xf32>
    %162 = arith.mulf %158, %161 : vector<8x64xf32>
    %163 = math.erf %162 : vector<8x64xf32>
    %cst_52 = arith.constant 1.000000e+00 : f32
    %164 = vector.broadcast %cst_52 : f32 to vector<8x64xf32>
    %165 = arith.addf %164, %163 : vector<8x64xf32>
    %166 = arith.mulf %160, %165 : vector<8x64xf32>
    %167 = arith.truncf %166 : vector<8x64xf32> to vector<8x64xbf16>
    %c0_53 = arith.constant 0 : index
    %c0_54 = arith.constant 0 : index
    %168 = vector.load %arg10[%c0_53, %c0_54] : memref<64x32xbf16, #tpu.memory_space<vmem>>, vector<64x32xbf16>
    %cst_55 = arith.constant dense<0.000000e+00> : vector<8x32xf32>
    %169 = tpu.matmul %167, %168, %cst_55 {dimension_numbers = #tpu.dot_dimension_numbers<[1], [0], [0], [1], [0, 0, 1, 1], [], []>} : vector<8x64xbf16>, vector<64x32xbf16>, vector<8x32xf32> -> vector<8x32xf32>
    %170 = arith.addf %126, %169 : vector<8x32xf32>
    %c0_56 = arith.constant 0 : index
    %c0_57 = arith.constant 0 : index
    %171 = vector.load %arg11[%c0_56, %c0_57] : memref<1x32xf32, #tpu.memory_space<vmem>>, vector<1x32xf32>
    %172 = vector.shape_cast %171 : vector<1x32xf32> to vector<32xf32>
    %173 = vector.shape_cast %172 : vector<32xf32> to vector<1x32xf32>
    %174 = vector.broadcast %173 : vector<1x32xf32> to vector<8x32xf32>
    %175 = arith.addf %170, %174 : vector<8x32xf32>
    %176 = vector.shape_cast %175 : vector<8x32xf32> to vector<1x8x32xf32>
    %c0_58 = arith.constant 0 : index
    %c0_59 = arith.constant 0 : index
    %c0_60 = arith.constant 0 : index
    %177 = vector.load %arg12[%c0_58, %c0_59, %c0_60] : memref<1x8x32xf32, #tpu.memory_space<vmem>>, vector<1x8x32xf32>
    tpu.vector_store %arg12[%c0_58, %c0_59, %c0_60], %176 {strides = array<i32>} : memref<1x8x32xf32, #tpu.memory_space<vmem>>, vector<1x8x32xf32>,
    return
  }
  func.func @transform_0(%arg0: i32) -> (i32, i32, i32) {
    %c0_i32 = arith.constant 0 : i32
    %c0_i32_0 = arith.constant 0 : i32
    %c0_i32_1 = arith.constant 0 : i32
    return %arg0, %c0_i32, %c0_i32_0 : i32, i32, i32
  }
  func.func @transform_1(%arg0: i32) -> (i32, i32) {
    %c0_i32 = arith.constant 0 : i32
    %c0_i32_0 = arith.constant 0 : i32
    %c0_i32_1 = arith.constant 0 : i32
    return %c0_i32, %c0_i32_0 : i32, i32
  }
  func.func @transform_2(%arg0: i32) -> (i32, i32) {
    %c0_i32 = arith.constant 0 : i32
    %c0_i32_0 = arith.constant 0 : i32
    %c0_i32_1 = arith.constant 0 : i32
    return %c0_i32, %c0_i32_0 : i32, i32
  }
  func.func @transform_3(%arg0: i32) -> (i32, i32) {
    %c0_i32 = arith.constant 0 : i32
    %c0_i32_0 = arith.constant 0 : i32
    %c0_i32_1 = arith.constant 0 : i32
    return %c0_i32, %c0_i32_0 : i32, i32
  }
  func.func @transform_4(%arg0: i32) -> (i32, i32) {
    %c0_i32 = arith.constant 0 : i32
    %c0_i32_0 = arith.constant 0 : i32
    %c0_i32_1 = arith.constant 0 : i32
    return %c0_i32, %c0_i32_0 : i32, i32
  }
  func.func @transform_5(%arg0: i32) -> (i32, i32) {
    %c0_i32 = arith.constant 0 : i32
    %c0_i32_0 = arith.constant 0 : i32
    %c0_i32_1 = arith.constant 0 : i32
    return %c0_i32, %c0_i32_0 : i32, i32
  }
  func.func @transform_6(%arg0: i32) -> (i32, i32) {
    %c0_i32 = arith.constant 0 : i32
    %c0_i32_0 = arith.constant 0 : i32
    %c0_i32_1 = arith.constant 0 : i32
    return %c0_i32, %c0_i32_0 : i32, i32
  }
  func.func @transform_7(%arg0: i32) -> (i32, i32) {
    %c0_i32 = arith.constant 0 : i32
    %c0_i32_0 = arith.constant 0 : i32
    %c0_i32_1 = arith.constant 0 : i32
    return %c0_i32, %c0_i32_0 : i32, i32
  }
  func.func @transform_8(%arg0: i32) -> (i32, i32) {
    %c0_i32 = arith.constant 0 : i32
    %c0_i32_0 = arith.constant 0 : i32
    %c0_i32_1 = arith.constant 0 : i32
    return %c0_i32, %c0_i32_0 : i32, i32
  }
  func.func @transform_9(%arg0: i32) -> (i32, i32) {
    %c0_i32 = arith.constant 0 : i32
    %c0_i32_0 = arith.constant 0 : i32
    %c0_i32_1 = arith.constant 0 : i32
    return %c0_i32, %c0_i32_0 : i32, i32
  }
  func.func @transform_10(%arg0: i32) -> (i32, i32) {
    %c0_i32 = arith.constant 0 : i32
    %c0_i32_0 = arith.constant 0 : i32
    %c0_i32_1 = arith.constant 0 : i32
    return %c0_i32, %c0_i32_0 : i32, i32
  }
  func.func @transform_11(%arg0: i32) -> (i32, i32, i32) {
    %c0_i32 = arith.constant 0 : i32
    %c0_i32_0 = arith.constant 0 : i32
    %c0_i32_1 = arith.constant 0 : i32
    return %arg0, %c0_i32, %c0_i32_0 : i32, i32, i32
  }
  func.func @transform_12(%arg0: i32) -> (i32, i32, i32, i32) {
    %c0_i32 = arith.constant 0 : i32
    %c0_i32_0 = arith.constant 0 : i32
    %c0_i32_1 = arith.constant 0 : i32
    %c0_i32_2 = arith.constant 0 : i32
    return %arg0, %c0_i32, %c0_i32_0, %c0_i32_1 : i32, i32, i32, i32
  }
}

</mosaic_0001>

<bundles_post_ra>
// kernel: tpu_custom_call.1
= control target key start
LH: loop header
LB: loop body
LE: loop exit
PB: predicated region body
PF: predicated region fallthrough
CT: control target
= control target key end

     0   :  { %s2542_s0 = inlined_call_operand.vmem [shape: f32[2,8,32], index: 0, kind: input, shape index: {}]   ;;  %s2543_s1 = inlined_call_operand.hbm [shape: f32[1,32], index: 1, kind: input, shape index: {}]   ;;  %s2544_s2 = inlined_call_operand.hbm [shape: f32[1,32], index: 2, kind: input, shape index: {}]   ;;  %s2545_s3 = inlined_call_operand.vmem [shape: bf16[32,96], index: 3, kind: input, shape index: {}]   ;;  %s2546_s4 = inlined_call_operand.hbm [shape: f32[1,96], index: 4, kind: input, shape index: {}]   ;;  %s2547_s5 = inlined_call_operand.vmem [shape: bf16[32,32], index: 5, kind: input, shape index: {}]   ;;  %s2548_s6 = inlined_call_operand.hbm [shape: f32[1,32], index: 6, kind: input, shape index: {}]   ;;  %s2549_s7 = inlined_call_operand.hbm [shape: bf16[32,64], index: 7, kind: input, shape index: {}]   ;;  %s2550_s8 = inlined_call_operand.hbm [shape: f32[1,64], index: 8, kind: input, shape index: {}]   ;;  %s2551_s9 = inlined_call_operand.vmem [shape: bf16[64,32], index: 9, kind: input, shape index: {}]   ;;  %s2552_s10 = inlined_call_operand.vmem [shape: f32[1,32], index: 10, kind: input, shape index: {}]   ;;  %s2553_s11 = inlined_call_operand.hbm [shape: f32[2,8,32], index: 11, kind: output, shape index: {0}]   ;;  %s2554_s12 = inlined_call_operand.hbm [shape: bf16[2,4,8,8], index: 12, kind: output, shape index: {1}]  }
   0x1   :  { %2561 = sst [smem:[#allocation25_spill]] %s2542_s0 }
   0x2   :  { %2562 = sst [smem:[#allocation26_spill]] %s2543_s1 }
   0x3   :  { %2563 = sst [smem:[#allocation27_spill]] %s2544_s2 }
   0x4   :  { %18 = vsyncpa [#allocation3], 0 }
   0x5   :  { %19 = vsyncpa [#allocation6], 0 }
   0x6   :  { %20 = vsyncpa [#allocation9], 0 }
   0x7   :  { %21 = vsyncpa [#allocation12], 0 }
   0x8   :  { %22 = vsyncpa [#allocation4], 0 }
   0x9   :  { %24 = vsyncpa [#allocation4 + $0x1], 0 }
   0xa   :  { %25 = vsyncpa [#allocation15], 0 }
   0xb   :  { %27 = vsyncpa [#allocation15 + $0x1], 0  ;;  %s2172_s21 = smov 0   ;;  %s2174_s22 = smov 0  }
   0xc   :  { %s2176_s23 = smov 0   ;;  %s2178_s24 = smov 0  }
   0xd LB: > { %2564 = sst [smem:[#allocation22_spill]] %s2074_s23  ;;  %s2193_s25 = sadd.s32 4294967295, %s2078_s24   ;;  %s2078_s24 = sphi %s2178_s24, %s2586_s24   ;;  %s2074_s23 = sphi %s2176_s23, %s2588_s23   ;;  %s2070_s22 = sphi %s2174_s22, %s2590_s22   ;;  %s2066_s21 = sphi %s2172_s21, %s2589_s21  }
   0xe   : > { %s1491_s26 = sadd.s32 4294967294, %s2078_s24   ;;  %s2197_s27 = sadd.s32 1, %s2078_s24  }
   0xf   : > { %2565 = sst [smem:[#allocation23_spill]] %s2197_s27  ;;  %s276_s28 = sadd.s32 1, %s2074_s23 }
  0x10   : > { %s273_s29 = ssub.s32 %s2078_s24, %s2197_s27  ;;  %p286_p0 = scmp.ne.s32.totalorder %s2074_s23, %s2070_s22 }
  0x11   : > { %p274_p1 = scmp.eq.s32.totalorder %s273_s29, 0  ;;  %p287_p2 = scmp.eq.s32.totalorder %s2193_s25, 1 }
  0x12   : > { %p292_p3 = scmp.ne.s32.totalorder %s2070_s22, %s2066_s21  ;;  %p293_p4 = scmp.eq.s32.totalorder %s1491_s26, 1 }
  0x13   : > { %s2208_s30 = scalar_select %p274_p1, %s2074_s23, %s276_s28  }
  0x14   : > { %p2210_p5 = por %p287_p2, %p286_p0  ;;  %p2214_p6 = por %p293_p4, %p292_p3 }
  0x15   : > { %2566 = sst [smem:[#allocation24_spill]] %s2208_s30  ;;  %p1492_p7 = scmp.ge.s32.totalorder %s2078_s24, 1 }
  0x16   : > { %s2567_s13 = scalar_select %p2210_p5, 1, 0 }
  0x17   : > { %s2568_s14 = scalar_select %p2214_p6, 1, 0 }
  0x18   : > { %p326_p8 = scmp.lt.s32.totalorder %s2078_s24, 3  ;;  %p2556_p9 = scmp.eq.s32.totalorder %s2193_s25, 0 }
  0x19   : > { %s2080_s16 = smov [#allocation5]   ;;  %s2081_s18 = smov [#allocation8]  }
  0x1a   : > { %p2221_p10 = pnand %p1492_p7, %p326_p8  ;;  %s350_s17 = sshll.u32 %s2080_s16, 4  ;;  %s351_s17 = int_to_ptr.vmem [resolvable:$true] %s350_s17 }
  0x1b   : > { %s378_s19 = sshll.u32 %s2081_s18, 4  ;;  %s2082_s26 = smov [#allocation2]   ;;  %s379_s19 = int_to_ptr.vmem [resolvable:$true] %s378_s19 }
  0x1c   : > { %s2569_s15 = scalar_select %p2221_p10, 1, 0 }
  0x1d   : > { %p1688_p11 = pneg %p2221_p10  ;;  %s339_s28 = sshll.u32 %s2082_s26, 4  ;;  %s2233_s28 = int_to_ptr.vmem [resolvable:$true] %s339_s28 }
  0x1e   : > { %s1827_s16 = scalar_lea.vmem %s351_s17, 16  ;;  %s1834_s18 = scalar_lea.vmem %s351_s17, 32 }
  0x1f   : > { %p2229_p12 = pnand %p2556_p9, %p1688_p11  ;;  %p1828_p0 = scmp.ne.s32.totalorder %s351_s17, %s1827_s16 }
  0x20   : > { %p1835_p3 = scmp.lt.s32.totalorder %s351_s17, %s351_s17  ;;  %p1836_p4 = scmp.lt.s32.totalorder %s1834_s18, %s1827_s16 }
  0x21   : > { %p2237_p13 = pneg %p2229_p12 }
  0x22   : > { %p1837_p7 = por %p1836_p4, %p1835_p3 }
  0x23   : > { %p1830_p1 = pnand %p1828_p0, %p2237_p13 }
  0x25   : > { %p1831_p2 = pneg %p1830_p1 }
  0x27   : > { %p1838_p8 = pnand %p1837_p7, %p1831_p2 }
  0x29   : > { %1841 = shalt.err (!%p1838_p8)
}
  0x2a   : > { %s2572_s2 = sld [smem:[#allocation27_spill]]  ;;  %s1853_s23 = scalar_lea.vmem %s379_s19, 16 }
  0x2b   : > { %p1854_p11 = scmp.ne.s32.totalorder %s379_s19, %s1853_s23  ;;  %s1860_s27 = scalar_lea.vmem %s379_s19, 32 }
  0x2c   : > { %p1861_p0 = scmp.lt.s32.totalorder %s379_s19, %s379_s19  ;;  %p1862_p1 = scmp.lt.s32.totalorder %s1860_s27, %s1853_s23 }
  0x2d   : > { %p1856_p9 = pnand %p1854_p11, %p2237_p13 }
  0x2e   : > { %p1863_p5 = por %p1862_p1, %p1861_p0 }
  0x2f   : > { %p1857_p6 = pneg %p1856_p9 }
  0x30   : > { %1694 = dma.hbm_to_vmem [thread:$0]  (!%p2229_p12), %s2572_s2, 16, %s351_s17, [#allocation6]  }
  0x31   : > { %p1864_p10 = pnand %p1863_p5, %p1857_p6 }
  0x33   : > { %1867 = shalt.err (!%p1864_p10)
}
  0x34   : > { %1700 = dma.hbm_to_vmem [thread:$0]  (!%p2229_p12), %s2548_s6, 16, %s379_s19, [#allocation9]  }
  0x35   : > { %s1879_s30 = scalar_lea.vmem %s2233_s28, 16  ;;  %s1886_s23 = scalar_lea.vmem %s2233_s28, 32 }
  0x36   : > { %p1880_p2 = scmp.ne.s32.totalorder %s2233_s28, %s1879_s30  ;;  %p1887_p5 = scmp.lt.s32.totalorder %s2233_s28, %s2233_s28 }
  0x37   : > { %p1888_p6 = scmp.lt.s32.totalorder %s1886_s23, %s1879_s30 }
  0x38   : > { %p1882_p9 = pnand %p1880_p2, %p2237_p13 }
  0x39   : > { %p1889_p10 = por %p1888_p6, %p1887_p5 }
  0x3a   : > { %p1883_p3 = pneg %p1882_p9 }
  0x3c   : > { %p1890_p4 = pnand %p1889_p10, %p1883_p3 }
  0x3e   : > { %1893 = shalt.err (!%p1890_p4)
}
  0x3f   : > { %s2573_s1 = sld [smem:[#allocation26_spill]]  ;;  %s2083_s19 = smov [#allocation7]  }
  0x40   : > { %s364_s26 = sshll.u32 %s2083_s19, 4  ;;  %s2084_s16 = smov [#allocation10]   ;;  %s365_s26 = int_to_ptr.vmem [resolvable:$true] %s364_s26 }
  0x41   : > { %s388_s18 = sshll.u32 %s2084_s16, 4  ;;  %s1905_s2 = scalar_lea.vmem %s365_s26, 16  ;;  %s389_s18 = int_to_ptr.vmem [resolvable:$true] %s388_s18 }
  0x42   : > { %p1906_p7 = scmp.ne.s32.totalorder %s365_s26, %s1905_s2  ;;  %s1912_s30 = scalar_lea.vmem %s365_s26, 32 }
  0x43   : > { %p1913_p0 = scmp.lt.s32.totalorder %s365_s26, %s365_s26  ;;  %p1914_p1 = scmp.lt.s32.totalorder %s1912_s30, %s1905_s2 }
  0x44   : > { %p1908_p8 = pnand %p1906_p7, %p2237_p13 }
  0x45   : > { %1691 = dma.hbm_to_vmem [thread:$0]  (!%p2229_p12), %s2573_s1, 16, %s2233_s28, [#allocation3]  }
  0x46   : > { %p1909_p11 = pneg %p1908_p8  ;;  %p1915_p2 = por %p1914_p1, %p1913_p0 }
  0x48   : > { %p1916_p9 = pnand %p1915_p2, %p1909_p11 }
  0x4a   : > { %1919 = shalt.err (!%p1916_p9)
}
  0x4b   : > { %1697 = dma.hbm_to_vmem [thread:$0]  (!%p2229_p12), %s2546_s4, 16, %s365_s26, [#allocation6]  }
  0x4c   : > { %s1931_s27 = scalar_lea.vmem %s389_s18, 256  ;;  %p1939_p10 = scmp.lt.s32.totalorder %s389_s18, %s389_s18 }
  0x4d   : > { %p1932_p3 = scmp.ne.s32.totalorder %s389_s18, %s1931_s27  ;;  %p1940_p4 = scmp.lt.s32.totalorder %s1931_s27, %s1931_s27 }
  0x4f   : > { %p1934_p5 = pnand %p1932_p3, %p2237_p13  ;;  %p1941_p7 = por %p1940_p4, %p1939_p10 }
  0x51   : > { %p1935_p6 = pneg %p1934_p5 }
  0x53   : > { %p1942_p8 = pnand %p1941_p7, %p1935_p6 }
  0x55   : > { %1945 = shalt.err (!%p1942_p8)
}
  0x56   : > { %s2085_s2 = smov 64   ;;  %s2086_s17 = smov 4  }
  0x57   : > { %1703 = dma.hbm_to_vmem [thread:$0]  (!%p2229_p12), %s2549_s7, 256, %s389_s18, [#allocation9], %s2085_s2, %s2085_s2, %s2086_s17  }
  0x58   : > { %s2087_s26 = smov [#allocation11]  }
  0x59   : > { %s402_s30 = sshll.u32 %s2087_s26, 4  ;;  %s403_s30 = int_to_ptr.vmem [resolvable:$true] %s402_s30 }
  0x5a   : > { %s1957_s23 = scalar_lea.vmem %s403_s30, 16  ;;  %s1964_s28 = scalar_lea.vmem %s403_s30, 32 }
  0x5b   : > { %p1958_p11 = scmp.ne.s32.totalorder %s403_s30, %s1957_s23  ;;  %p1965_p2 = scmp.lt.s32.totalorder %s403_s30, %s403_s30 }
  0x5c   : > { %p1966_p9 = scmp.lt.s32.totalorder %s1964_s28, %s1957_s23 }
  0x5d   : > { %p1960_p0 = pnand %p1958_p11, %p2237_p13 }
  0x5e   : > { %p1967_p3 = por %p1966_p9, %p1965_p2 }
  0x5f   : > { %p1961_p1 = pneg %p1960_p0 }
  0x61   : > { %p1968_p5 = pnand %p1967_p3, %p1961_p1 }
  0x63   : > { %1971 = shalt.err (!%p1968_p5)
}
  0x64   : > { %1706 = dma.hbm_to_vmem [thread:$0]  (!%p2229_p12), %s2550_s8, 16, %s403_s30, [#allocation12]  }
  0x65   : > { %p2574_p6 = scmp.ne.s32.totalorder %s2569_s15, 0 }
  0x66   : > { %p2575_p10 = scmp.eq.s32.totalorder (!%p2574_p6), %s2193_s25, 0 }
  0x67   : > { %428 = sbr.rel (%p2574_p6) target bundleno = 2570 (0xa0a), region = 64 }
  0x6c   : > { %2041 = dma.done.wait (%p2575_p10), [#allocation3], 16   ;;  %p2576_p13 = pmov %p2575_p10 }
  0x6d   : > { %p2577_p4 = pmov %p2575_p10 }
  0x6e   : > { %2043 = vsyncadd (%p2576_p13), [#allocation3], 4294967280 }
  0x6f   : > { %2045 = dma.done.wait (%p2577_p4), [#allocation6], 32   ;;  %p2578_p7 = pmov %p2577_p4 }
  0x70   : > { %p2579_p8 = pmov %p2577_p4 }
  0x71   : > { %2047 = vsyncadd (%p2578_p7), [#allocation6], 4294967264 }
  0x72   : > { %2049 = dma.done.wait (%p2579_p8), [#allocation9], 272   ;;  %p2580_p12 = pmov %p2577_p4 }
  0x73   : > { %p2581_p11 = pmov %p2577_p4 }
  0x74   : > { %2051 = vsyncadd (%p2580_p12), [#allocation9], 4294967024 }
  0x75   : > { %2053 = dma.done.wait (%p2581_p11), [#allocation12], 16   ;;  %p2582_p0 = pmov %p2577_p4 }
  0x76   : > { %p494_p1 = scmp.lt.s32.totalorder %s2193_s25, 1  ;;  %s2583_s0 = sld [smem:[#allocation25_spill]]  ;;  %vm502_vm0 = vcmask 261120   ;;  %v1784_v7 = vld [vmem:[%s2545_s3 + $0x8] sm:$0xff]   ;;  %v2088_v8 = vmov 0.0   ;;  %vm2089_vm1 = vmmov 0  }
  0x77   : > { %2055 = vsyncadd (%p2582_p0), [#allocation12], 4294967280  ;;  %1576 = vmatprep.subr.bf16.mxu0 %v2088_v8  ;;  %1580 = vmatprep.mubr.msk.bf16.mxu0 %vm2089_vm1, %v2088_v8  ;;  %v1785_v9 = vld [vmem:[%s2545_s3] sm:$0xff]   ;;  %s2090_s26 = smov 120   ;;  %s2091_s30 = smov 96   ;;  %vm602_vm2 = vcmask 64512  }
  0x78   : > { %s495_s1 = scalar_select %p494_p1, %s2193_s25, 1  ;;  %1577 = vmatpush3.bf16.msra.mxu0 %v1784_v7  ;;  %1584 = vmatprep.subr.bf16.mxu1 %v2088_v8  ;;  %v2332_v14 = vld [vmem:[#allocation2] ss:$0 sm:$0xff]  ;;  %v2334_v16 = vld [vmem:[#allocation5] ss:$0 sm:$0xff]  ;;  %vm666_vm3 = vcmask 1043456  }
  0x79   : > { %1578 = vmatprep.subr.bf16.mxu0 %v2088_v8  ;;  %1586 = vmatprep.mubr.msk.bf16.mxu1 %vm2089_vm1, %v2088_v8  ;;  %v1512_v20 = vld [vmem:[#allocation7] ss:$0 sm:$0xff]  ;;  %s2092_s23 = smov 88   ;;  %s2093_s28 = smov 80   ;;  %vm1040_vm4 = vcmask 60416   ;;  %vm1058_vm5 = vcmask 130048  }
  0x7a   : > { %s1509_s15 = sshll.u32 %s495_s1, 3  ;;  %s2094_s27 = smov 112   ;;  %vm1060_vm6 = vcmask 195584   ;;  %vm1251_vm7 = vcmask 523264  }
  0x7b   : > { %s2095_s1 = smov 72   ;;  %s2097_s20 = smov 64  }
  0x7c   : > { %s497_s18 = scalar_lea.vmem %s2583_s0, %s1509_s15  ;;  %1579 = vmatpush3.bf16.msra.mxu0 %v1785_v9  ;;  %s2096_s15 = smov 104  }
  0x7d   : > { %v2312_v0 = vld [vmem:[%s497_s18] sm:$0xff]  ;;  %1590 = vmatprep.subr.bf16.mxu0 %v2088_v8  ;;  %s2098_s29 = smov 56   ;;  %s2099_s18 = smov 48  }
  0x7e   : > { %v503_v1 = vsel %vm502_vm0, %v2312_v0, 0.0  ;;  %s2100_s2 = smov 40   ;;  %s2387_s17 = sand.u32 1, %s2070_s22  }
  0x7f   : > { %504 = vadd.xlane.f32.xlu0 %v503_v1  ;;  %s1508_s19 = sshll.u32 %s2387_s17, 4  ;;  %p2584_p9 = scmp.ne.s32.totalorder %s2567_s13, 0 }
  0x80   : > { %s2391_s16 = scalar_lea.vmem [#allocation14], %s1508_s19 }
 0x108   : > { %v505_v2 = vpop.xlane.xlu0 %504 }
 0x109   : > { %v507_v3 = vmul.f32 0.03125, %v505_v2 }
 0x10b   : > { %v508_v4 = vsub.f32 %v2312_v0, %v507_v3 }
 0x10d   : > { %v509_v5 = vmul.f32 %v508_v4, %v508_v4 }
 0x10f   : > { %v510_v6 = vsel %vm502_vm0, %v509_v5, 0.0 }
 0x110   : > { %511 = vadd.xlane.f32.xlu0 %v510_v6 }
 0x199   : > { %v512_v10 = vpop.xlane.xlu0 %511 }
 0x19a   : > { %v513_v11 = vmul.f32 0.03125, %v512_v10 }
 0x19c   : > { %v514_v12 = vadd.f32 1e-06, %v513_v11 }
 0x19e   : > { %1794 = vrsqrt.f32 %v514_v12 }
 0x1ab   : > { %v1795_v13 = vpop.eup %1794 }
 0x1ac   : > { %v516_v15 = vmul.f32 %v1795_v13, %v508_v4 }
 0x1ae   : > { %v523_v17 = vmul.f32 %v2332_v14, %v516_v15 }
 0x1b0   : > { %v530_v18 = vadd.f32 %v2334_v16, %v523_v17 }
 0x1b2   : > { %v531_v19 = vpack.c.bf16 %v530_v18, %v530_v18 }
 0x1b4   : > { %1581 = vmatmul.mubr.msk.bf16.vlgmr.msra.gmra.mxu0 %vm502_vm0, %v531_v19 }
 0x1b5   : > { %1592 = vmatprep.mubr.msk.bf16.mxu0 %vm2089_vm1, %v2088_v8 }
 0x274   : > { %v592_v21 = vpop.f32.mrf.mxu0 }
 0x275   : > { %v593_v22 = vadd.f32 %v1512_v20, %v592_v21 }
 0x276   : > { %v1582_v23 = vpop.f32.mrf.mxu0 }
 0x277   : > { %v2341_v24 = vpack.c.bf16 %v593_v22, %v593_v22 }
 0x278   : > { %v595_v25 = vpop.f32.mrf.mxu0 }
 0x279   : > { %710 = vrot.lane.b32.xlu0 %v2341_v24, %s2090_s26  ;;  %600 = vrot.lane.b32.xlu1 %v2341_v24, %s2091_s30  ;;  %s2101_s26 = smov 8  }
 0x27a   : > { %v1583_v26 = vpop.f32.mrf.mxu0 }
 0x27d   : > { %712 = vrot.lane.b32.xlu1 %v2341_v24, %s2092_s23 }
 0x281   : > { %822 = vrot.lane.b32.xlu1 %v2341_v24, %s2093_s28 }
 0x285   : > { %820 = vrot.lane.b32.xlu1 %v2341_v24, %s2094_s27  ;;  %s1337_s27 = sshll.u32 %s2391_s16, 4  ;;  %s2458_s27 = int_to_ptr.vmem [resolvable:$true] %s1337_s27 }
 0x286   : > { %s1972_s19 = scalar_lea.vmem %s2458_s27, 256 }
 0x287   : > { %p1973_p2 = scmp.ne.s32.totalorder %s2458_s27, %s1972_s19 }
 0x289   : > { %932 = vrot.lane.b32.xlu1 %v2341_v24, %s2095_s1  ;;  %s2102_s1 = smov 16   ;;  %p1974_p3 = pnand %p1973_p2, %p2584_p9 }
 0x28b   : > { %p1975_p5 = pneg %p1974_p3 }
 0x28d   : > { %930 = vrot.lane.b32.xlu1 %v2341_v24, %s2096_s15  ;;  %s2103_s15 = smov 24  }
 0x2eb   : > { %v601_v27 = vpop.permute.xlu1 %600  ;;  %v711_v32 = vpop.permute.xlu0 %710 }
 0x2ec   : > { %v607_v28 = vsel %vm602_vm2, %v601_v27, 0 }
 0x2ed   : > { %1585 = vmatpush3.bf16.xpose.msra.mxu1 %v607_v28 }
 0x2ee   : > { %1596 = vmatprep.subr.bf16.mxu1 %v2088_v8 }
 0x2ef   : > { %v713_v29 = vpop.permute.xlu1 %712 }
 0x2f0   : > { %v718_v30 = vsel %vm602_vm2, %v713_v29, 0 }
 0x2f3   : > { %v823_v31 = vpop.permute.xlu1 %822 }
 0x2f4   : > { %1587 = vmatmul.mubr.msk.bf16.vlgmr.msra.gmra.mxu1 %vm602_vm2, %v2341_v24  ;;  %v828_v34 = vsel %vm602_vm2, %v823_v31, 0 }
 0x2f5   : > { %1597 = vmatpush3.bf16.xpose.msra.mxu1 %v718_v30  ;;  %1598 = vmatprep.mubr.msk.bf16.mxu1 %vm2089_vm1, %v2088_v8 }
 0x2f6   : > { %1608 = vmatprep.subr.bf16.mxu1 %v2088_v8 }
 0x2f7   : > { %v821_v33 = vpop.permute.xlu1 %820 }
 0x2fb   : > { %v933_v35 = vpop.permute.xlu1 %932 }
 0x2fc   : > { %1599 = vmatmul.mubr.msk.bf16.vlgmr.msra.gmra.mxu1 %vm602_vm2, %v711_v32  ;;  %v938_v36 = vsel %vm602_vm2, %v933_v35, 0 }
 0x2fd   : > { %1609 = vmatpush3.bf16.xpose.msra.mxu1 %v828_v34  ;;  %1610 = vmatprep.mubr.msk.bf16.mxu1 %vm2089_vm1, %v2088_v8 }
 0x2fe   : > { %1620 = vmatprep.subr.bf16.mxu1 %v2088_v8 }
 0x2ff   : > { %v931_v37 = vpop.permute.xlu1 %930 }
 0x304   : > { %1611 = vmatmul.mubr.msk.bf16.vlgmr.msra.gmra.mxu1 %vm602_vm2, %v821_v33 }
 0x305   : > { %1621 = vmatpush3.bf16.xpose.msra.mxu1 %v938_v36  ;;  %1622 = vmatprep.mubr.msk.bf16.mxu1 %vm2089_vm1, %v2088_v8 }
 0x306   : > { %1632 = vmatprep.subr.bf16.mxu1 %v2088_v8 }
 0x30c   : > { %1623 = vmatmul.mubr.msk.bf16.vlgmr.msra.gmra.mxu1 %vm602_vm2, %v931_v37 }
 0x30d   : > { %1636 = vmatprep.mubr.msk.bf16.mxu1 %vm2089_vm1, %v2088_v8 }
 0x3b4   : > { %v643_v38 = vpop.f32.mrf.mxu1 }
 0x3b5   : > { %v649_v39 = vsel %vm602_vm2, %v643_v38, -inf }
 0x3b6   : > { %650 = vmax.xlane.f32.xlu1 %v649_v39  ;;  %v1588_v40 = vpop.f32.mrf.mxu1 }
 0x3b8   : > { %v646_v41 = vpop.f32.mrf.mxu1 }
 0x3ba   : > { %v1589_v42 = vpop.f32.mrf.mxu1 }
 0x3bc   : > { %v754_v43 = vpop.f32.mrf.mxu1 }
 0x3bd   : > { %v760_v44 = vsel %vm602_vm2, %v754_v43, -inf }
 0x3be   : > { %761 = vmax.xlane.f32.xlu0 %v760_v44  ;;  %v1600_v45 = vpop.f32.mrf.mxu1 }
 0x3c0   : > { %v757_v46 = vpop.f32.mrf.mxu1 }
 0x3c2   : > { %v1601_v47 = vpop.f32.mrf.mxu1 }
 0x3c4   : > { %v864_v48 = vpop.f32.mrf.mxu1 }
 0x3c5   : > { %v870_v49 = vsel %vm602_vm2, %v864_v48, -inf }
 0x3c6   : > { %871 = vmax.xlane.f32.xlu1 %v870_v49  ;;  %v1612_v50 = vpop.f32.mrf.mxu1 }
 0x3c7   : > { %v1786_v50 = vld [vmem:[%s2547_s5 + $0x8] sm:$0xff]  }
 0x3c8   : > { %v867_v51 = vpop.f32.mrf.mxu1  ;;  %1633 = vmatpush3.bf16.msra.mxu1 %v1786_v50 }
 0x3c9   : > { %v1787_v51 = vld [vmem:[%s2547_s5] sm:$0xff]   ;;  %1634 = vmatprep.subr.bf16.mxu1 %v2088_v8 }
 0x3ca   : > { %v1613_v52 = vpop.f32.mrf.mxu1 }
 0x3cc   : > { %v974_v53 = vpop.f32.mrf.mxu1  ;;  %1635 = vmatpush3.bf16.msra.mxu1 %v1787_v51 }
 0x3cd   : > { %v980_v54 = vsel %vm602_vm2, %v974_v53, -inf  ;;  %1648 = vmatprep.subr.bf16.mxu1 %v2088_v8 }
 0x3ce   : > { %981 = vmax.xlane.f32.xlu0 %v980_v54  ;;  %v1624_v55 = vpop.f32.mrf.mxu1 }
 0x3d0   : > { %v977_v56 = vpop.f32.mrf.mxu1 }
 0x3d2   : > { %v1625_v57 = vpop.f32.mrf.mxu1 }
 0x43f   : > { %v651_v58 = vpop.xlane.xlu1 %650 }
 0x440   : > { %v652_v59 = vsub.f32 %v643_v38, %v651_v58 }
 0x442   : > { %v653_v60 = vmul.f32 1.442695, %v652_v59 }
 0x444   : > { %1796 = vpow2.f32 %v653_v60 }
 0x447   : > { %v762_v61 = vpop.xlane.xlu0 %761 }
 0x448   : > { %v763_v62 = vsub.f32 %v754_v43, %v762_v61 }
 0x44a   : > { %v764_v63 = vmul.f32 1.442695, %v763_v62 }
 0x44c   : > { %1798 = vpow2.f32 %v764_v63 }
 0x44f   : > { %v872_v11 = vpop.xlane.xlu1 %871 }
 0x450   : > { %v873_v12 = vsub.f32 %v864_v48, %v872_v11 }
 0x451   : > { %v1797_v1 = vpop.eup %1796 }
 0x452   : > { %v655_v2 = vsel %vm602_vm2, %v1797_v1, 0.0  ;;  %v874_v13 = vmul.f32 1.442695, %v873_v12 }
 0x453   : > { %656 = vadd.xlane.f32.xlu1 %v655_v2 }
 0x457   : > { %v982_v3 = vpop.xlane.xlu0 %981 }
 0x458   : > { %v983_v4 = vsub.f32 %v974_v53, %v982_v3 }
 0x459   : > { %v1799_v5 = vpop.eup %1798 }
 0x45a   : > { %v984_v6 = vmul.f32 1.442695, %v983_v4  ;;  %v766_v7 = vsel %vm602_vm2, %v1799_v5, 0.0 }
 0x45b   : > { %767 = vadd.xlane.f32.xlu0 %v766_v7 }
 0x45c   : > { %1800 = vpow2.f32 %v984_v6 }
 0x45d   : > { %1802 = vpow2.f32 %v874_v13 }
 0x464   : > { %661 = vrot.lane.b32.xlu1 %v2341_v24, %s2097_s20 }
 0x469   : > { %v1801_v9 = vpop.eup %1800 }
 0x46a   : > { %v986_v10 = vsel %vm602_vm2, %v1801_v9, 0.0  ;;  %v1803_v15 = vpop.eup %1802 }
 0x46b   : > { %987 = vadd.xlane.f32.xlu0 %v986_v10  ;;  %v876_v17 = vsel %vm602_vm2, %v1803_v15, 0.0 }
 0x481   : > { %772 = vrot.lane.b32.xlu0 %v2341_v24, %s2098_s29 }
 0x488   : > { %877 = vadd.xlane.f32.xlu1 %v876_v17 }
 0x499   : > { %882 = vrot.lane.b32.xlu1 %v2341_v24, %s2099_s18 }
 0x49d   : > { %992 = vrot.lane.b32.xlu1 %v2341_v24, %s2100_s2  ;;  %s1311_s2 = scalar_lea.sflag [#allocation15], %s2387_s17 }
 0x4dc   : > { %v657_v18 = vpop.xlane.xlu1 %656 }
 0x4dd   : > { %1804 = vrcp.f32 %v657_v18 }
 0x4e0   : > { %v662_v19 = vpop.permute.xlu1 %661 }
 0x4e1   : > { %v668_v20 = vsel %vm666_vm3, %v662_v19, 0 }
 0x4e2   : > { %1591 = vmatpush3.bf16.msra.mxu0 %v668_v20  ;;  %v1788_v20 = vld [vmem:[#allocation10 + $0x8] sm:$0xff]  }
 0x4e3   : > { %1602 = vmatprep.subr.bf16.mxu0 %v2088_v8 }
 0x4e4   : > { %v768_v21 = vpop.xlane.xlu0 %767 }
 0x4e5   : > { %1806 = vrcp.f32 %v768_v21 }
 0x4ea   : > { %v1805_v22 = vpop.eup %1804 }
 0x4eb   : > { %v659_v23 = vmul.f32 %v1805_v22, %v1797_v1 }
 0x4ed   : > { %v660_v25 = vpack.c.bf16 %v659_v23, %v659_v23 }
 0x4ef   : > { %1593 = vmatmul.mubr.msk.bf16.vlgmr.msra.gmra.mxu0 %vm602_vm2, %v660_v25  ;;  %1041 = vst.msk [vmem:[%s2391_s16] sm:$0xf] %vm1040_vm4, %v660_v25 }
 0x4f0   : > { %1604 = vmatprep.mubr.msk.bf16.mxu0 %vm2089_vm1, %v2088_v8 }
 0x4f2   : > { %v1807_v24 = vpop.eup %1806 }
 0x4f3   : > { %v770_v26 = vmul.f32 %v1807_v24, %v1799_v5  ;;  %v1527_v5 = vld [vmem:[#allocation8] ss:$0 sm:$0xff] }
 0x4f4   : > { %v988_v27 = vpop.xlane.xlu0 %987 }
 0x4f5   : > { %1808 = vrcp.f32 %v988_v27  ;;  %v771_v28 = vpack.c.bf16 %v770_v26, %v770_v26 }
 0x4f7   : > { %1042 = vst.msk [vmem:[%s2391_s16 + $0x4] sm:$0xf] %vm1040_vm4, %v771_v28 }
 0x4f8   : > { %v773_v29 = vpop.permute.xlu0 %772 }
 0x4f9   : > { %v778_v30 = vsel %vm666_vm3, %v773_v29, 0  ;;  %v1790_v29 = vld [vmem:[%s2551_s9 + $0x18] sm:$0xff]  }
 0x4fa   : > { %1603 = vmatpush3.bf16.msra.mxu0 %v778_v30  ;;  %v1791_v30 = vld [vmem:[%s2551_s9 + $0x10] sm:$0xff]  }
 0x4fb   : > { %1614 = vmatprep.subr.bf16.mxu0 %v2088_v8 }
 0x4fd   : > { %1605 = vmatmul.mubr.msk.bf16.vlgmr.msra.gmra.mxu0 %vm602_vm2, %v771_v28 }
 0x4fe   : > { %1616 = vmatprep.mubr.msk.bf16.mxu0 %vm2089_vm1, %v2088_v8 }
 0x502   : > { %v1809_v31 = vpop.eup %1808 }
 0x503   : > { %v990_v32 = vmul.f32 %v1809_v31, %v1801_v9  ;;  %v1528_v31 = vld [vmem:[#allocation11] ss:$0 sm:$0xff] }
 0x505   : > { %v991_v33 = vpack.c.bf16 %v990_v32, %v990_v32 }
 0x507   : > { %1044 = vst.msk [vmem:[%s2391_s16 + $0xc] sm:$0xf] %vm1040_vm4, %v991_v33 }
 0x511   : > { %v878_v34 = vpop.xlane.xlu1 %877 }
 0x512   : > { %1810 = vrcp.f32 %v878_v34 }
 0x515   : > { %v883_v35 = vpop.permute.xlu1 %882 }
 0x516   : > { %v888_v36 = vsel %vm666_vm3, %v883_v35, 0 }
 0x517   : > { %1615 = vmatpush3.bf16.msra.mxu0 %v888_v36 }
 0x518   : > { %1626 = vmatprep.subr.bf16.mxu0 %v2088_v8 }
 0x519   : > { %v993_v39 = vpop.permute.xlu1 %992 }
 0x51a   : > { %v998_v41 = vsel %vm666_vm3, %v993_v39, 0 }
 0x51f   : > { %v1811_v37 = vpop.eup %1810 }
 0x520   : > { %v880_v38 = vmul.f32 %v1811_v37, %v1803_v15 }
 0x522   : > { %v881_v40 = vpack.c.bf16 %v880_v38, %v880_v38 }
 0x524   : > { %1617 = vmatmul.mubr.msk.bf16.vlgmr.msra.gmra.mxu0 %vm602_vm2, %v881_v40  ;;  %1043 = vst.msk [vmem:[%s2391_s16 + $0x8] sm:$0xf] %vm1040_vm4, %v881_v40 }
 0x525   : > { %1627 = vmatpush3.bf16.msra.mxu0 %v998_v41  ;;  %1628 = vmatprep.mubr.msk.bf16.mxu0 %vm2089_vm1, %v2088_v8 }
 0x526   : > { %1640 = vmatprep.subr.bf16.mxu0 %v2088_v8 }
 0x52c   : > { %1629 = vmatmul.mubr.msk.bf16.vlgmr.msra.gmra.mxu0 %vm602_vm2, %v991_v33 }
 0x52d   : > { %1644 = vmatprep.mubr.msk.bf16.mxu0 %vm2089_vm1, %v2088_v8  ;;  %1641 = vmatpush3.bf16.msra.mxu0 %v1788_v20 }
 0x52e   : > { %1642 = vmatprep.subr.bf16.mxu0 %v2088_v8 }
 0x5af   : > { %v704_v42 = vpop.f32.mrf.mxu0 }
 0x5b1   : > { %v1594_v43 = vpop.f32.mrf.mxu0 }
 0x5b3   : > { %v707_v44 = vpop.f32.mrf.mxu0 }
 0x5b5   : > { %v1595_v45 = vpop.f32.mrf.mxu0 }
 0x5bd   : > { %v814_v46 = vpop.f32.mrf.mxu0 }
 0x5be   : > { %1046 = vrot.lane.b32.xlu0 %v814_v46, %s2101_s26  ;;  %s2104_s26 = smov [#allocation14]  }
 0x5bf   : > { %v1606_v47 = vpop.f32.mrf.mxu0  ;;  %s1976_s30 = sshll.u32 %s2104_s26, 4  ;;  %s1977_s30 = int_to_ptr.vmem [resolvable:$false] %s1976_s30 }
 0x5c0   : > { %s1978_s16 = scalar_lea.vmem %s1977_s30, 512  ;;  %p1979_p6 = scmp.lt.s32.totalorder %s2458_s27, %s1977_s30 }
 0x5c1   : > { %v817_v48 = vpop.f32.mrf.mxu0  ;;  %p1980_p10 = scmp.lt.s32.totalorder %s1978_s16, %s1972_s19 }
 0x5c3   : > { %v1607_v49 = vpop.f32.mrf.mxu0  ;;  %p1981_p13 = por %p1980_p10, %p1979_p6 }
 0x5c5   : > { %p1982_p4 = pnand %p1981_p13, %p1975_p5 }
 0x5e4   : > { %v924_v52 = vpop.f32.mrf.mxu0 }
 0x5e5   : > { %1050 = vrot.lane.b32.xlu1 %v924_v52, %s2102_s1  ;;  %s1545_s1 = sshll.u32 %s2193_s25, 8 }
 0x5e6   : > { %v1618_v53 = vpop.f32.mrf.mxu0  ;;  %s2463_s18 = scalar_lea.hbm %s2554_s12, %s1545_s1 }
 0x5e8   : > { %v927_v54 = vpop.f32.mrf.mxu0 }
 0x5ea   : > { %v1619_v55 = vpop.f32.mrf.mxu0 }
 0x5ec   : > { %v1034_v56 = vpop.f32.mrf.mxu0 }
 0x5ed   : > { %1054 = vrot.lane.b32.xlu0 %v1034_v56, %s2103_s15 }
 0x5ee   : > { %v1630_v57 = vpop.f32.mrf.mxu0 }
 0x5f0   : > { %v1037_v58 = vpop.f32.mrf.mxu0 }
 0x5f2   : > { %v1631_v59 = vpop.f32.mrf.mxu0 }
 0x630   : > { %v1047_v60 = vpop.permute.xlu0 %1046 }
 0x631   : > { %v1057_v62 = vsel %vm602_vm2, %v704_v42, %v1047_v60 }
 0x657   : > { %v1051_v61 = vpop.permute.xlu1 %1050 }
 0x658   : > { %v1059_v63 = vsel %vm1058_vm5, %v1057_v62, %v1051_v61 }
 0x65f   : > { %v1055_v1 = vpop.permute.xlu0 %1054 }
 0x660   : > { %v1061_v2 = vsel %vm1060_vm6, %v1059_v63, %v1055_v1 }
 0x661   : > { %v1062_v3 = vpack.c.bf16 %v1061_v2, %v1061_v2 }
 0x663   : > { %1637 = vmatmul.mubr.msk.bf16.vlgmr.msra.gmra.mxu1 %vm502_vm0, %v1062_v3 }
 0x664   : > { %1656 = vmatprep.mubr.msk.bf16.mxu1 %vm2089_vm1, %v2088_v8  ;;  %1649 = vmatpush3.bf16.msra.mxu1 %v1790_v29 }
 0x665   : > { %1650 = vmatprep.subr.bf16.mxu1 %v2088_v8 }
 0x668   : > { %1651 = vmatpush3.bf16.msra.mxu1 %v1791_v30 }
 0x669   : > { %1652 = vmatprep.subr.bf16.mxu1 %v2088_v8 }
 0x723   : > { %v1116_v4 = vpop.f32.mrf.mxu1 }
 0x724   : > { %v1122_v6 = vadd.f32 %v1116_v4, %v2312_v0  ;;  %v1789_v0 = vld [vmem:[#allocation10] sm:$0xff]  }
 0x725   : > { %v1638_v7 = vpop.f32.mrf.mxu1  ;;  %1643 = vmatpush3.bf16.msra.mxu0 %v1789_v0 }
 0x726   : > { %v2431_v9 = vadd.f32 %v1527_v5, %v1122_v6 }
 0x727   : > { %v1119_v10 = vpop.f32.mrf.mxu1 }
 0x728   : > { %v1131_v11 = vsel %vm502_vm0, %v2431_v9, 0.0 }
 0x729   : > { %1132 = vadd.xlane.f32.xlu1 %v1131_v11  ;;  %v1639_v12 = vpop.f32.mrf.mxu1 }
 0x7b2   : > { %v1133_v13 = vpop.xlane.xlu1 %1132 }
 0x7b3   : > { %v1134_v15 = vmul.f32 0.03125, %v1133_v13 }
 0x7b5   : > { %v1135_v17 = vsub.f32 %v2431_v9, %v1134_v15 }
 0x7b7   : > { %v1136_v18 = vmul.f32 %v1135_v17, %v1135_v17 }
 0x7b9   : > { %v1137_v19 = vsel %vm502_vm0, %v1136_v18, 0.0 }
 0x7ba   : > { %1138 = vadd.xlane.f32.xlu0 %v1137_v19 }
 0x843   : > { %v1139_v21 = vpop.xlane.xlu0 %1138 }
 0x844   : > { %v1140_v22 = vmul.f32 0.03125, %v1139_v21 }
 0x846   : > { %v1141_v23 = vadd.f32 1e-06, %v1140_v22 }
 0x848   : > { %1812 = vrsqrt.f32 %v1141_v23 }
 0x855   : > { %v1813_v25 = vpop.eup %1812 }
 0x856   : > { %v1143_v24 = vmul.f32 %v1813_v25, %v1135_v17 }
 0x858   : > { %v1144_v26 = vmul.f32 %v2332_v14, %v1143_v24  ;;  %v1792_v14 = vld [vmem:[%s2551_s9 + $0x8] sm:$0xff]  }
 0x859   : > { %1653 = vmatpush3.bf16.msra.mxu1 %v1792_v14 }
 0x85a   : > { %v1145_v27 = vadd.f32 %v2334_v16, %v1144_v26  ;;  %1654 = vmatprep.subr.bf16.mxu1 %v2088_v8  ;;  %v1793_v16 = vld [vmem:[%s2551_s9] sm:$0xff]  }
 0x85c   : > { %v1146_v28 = vpack.c.bf16 %v1145_v27, %v1145_v27 }
 0x85d   : > { %1655 = vmatpush3.bf16.msra.mxu1 %v1793_v16 }
 0x85e   : > { %1645 = vmatmul.mubr.msk.bf16.vlgmr.msra.gmra.mxu0 %vm502_vm0, %v1146_v28 }
 0x91e   : > { %v1207_v32 = vpop.f32.mrf.mxu0 }
 0x91f   : > { %v1208_v33 = vadd.f32 %v1528_v31, %v1207_v32 }
 0x920   : > { %v1646_v34 = vpop.f32.mrf.mxu0 }
 0x921   : > { %v1214_v35 = vmul.f32 0.70710677, %v1208_v33  ;;  %v1213_v39 = vmul.f32 0.5, %v1208_v33 }
 0x922   : > { %v1210_v36 = vpop.f32.mrf.mxu0 }
 0x923   : > { %1814 = verf.f32 %v1214_v35 }
 0x924   : > { %v1647_v37 = vpop.f32.mrf.mxu0 }
 0x930   : > { %v1815_v38 = vpop.eup %1814 }
 0x931   : > { %v1216_v8 = vadd.f32 1.0, %v1815_v38 }
 0x933   : > { %v1217_v40 = vmul.f32 %v1216_v8, %v1213_v39 }
 0x935   : > { %v1218_v41 = vpack.c.bf16 %v1217_v40, %v1217_v40 }
 0x937   : > { %1657 = vmatmul.mubr.msk.bf16.vlgmr.msra.gmra.mxu1 %vm1251_vm7, %v1218_v41 }
 0x938   : > { %1985 = shalt.err (!%p1982_p4)
}
 0x939   : > { %s1986_s23 = scalar_lea.hbm %s2463_s18, 256  ;;  %s1990_s15 = scalar_lea.hbm %s2554_s12, 512 }
 0x93a   : > { %p1987_p7 = scmp.ne.s32.totalorder %s2463_s18, %s1986_s23  ;;  %p1991_p11 = scmp.lt.s32.totalorder %s2463_s18, %s2554_s12 }
 0x93b   : > { %p1992_p0 = scmp.lt.s32.totalorder %s1990_s15, %s1986_s23 }
 0x93c   : > { %p1988_p8 = pnand %p1987_p7, %p2584_p9 }
 0x93d   : > { %p1993_p1 = por %p1992_p0, %p1991_p11 }
 0x93e   : > { %p1989_p12 = pneg %p1988_p8 }
 0x940   : > { %p1994_p2 = pnand %p1993_p1, %p1989_p12 }
 0x942   : > { %1997 = shalt.err (!%p1994_p2)
}
 0x943   : > { %s2105_s19 = smov 4   ;;  %s1507_s30 = sshll.u32 %s2387_s17, 3  ;;  %v1537_v43 = vld [vmem:[%s2552_s10] ss:$0 sm:$0xff] }
 0x944   : > { %1685 = dma.vmem_to_hbm [thread:$0]  (%p2584_p9), %s2458_s27, 256, %s2463_s18, %s1311_s2, %s2097_s20, %s2097_s20, %s2105_s19  }
 0x945   : > { %s1540_s28 = sshll.u32 %s2193_s25, 7  ;;  %s486_s1 = scalar_lea.vmem [#allocation13], %s1507_s30 }
 0x946   : > { %s1324_s15 = sshll.u32 %s486_s1, 4  ;;  %s2499_s0 = scalar_lea.hbm %s2553_s11, %s1540_s28  ;;  %s2501_s15 = int_to_ptr.vmem [resolvable:$true] %s1324_s15 }
 0x947   : > { %s1306_s25 = scalar_lea.sflag [#allocation4], %s2387_s17  ;;  %s1998_s20 = scalar_lea.vmem %s2501_s15, 128 }
 0x948   : > { %p1999_p3 = scmp.ne.s32.totalorder %s2501_s15, %s1998_s20  ;;  %s2106_s27 = smov [#allocation13]  }
 0x949   : > { %s2002_s18 = sshll.u32 %s2106_s27, 4  ;;  %s2003_s18 = int_to_ptr.vmem [resolvable:$false] %s2002_s18 }
 0x94a   : > { %p2000_p5 = pnand %p1999_p3, %p2584_p9  ;;  %s2004_s2 = scalar_lea.vmem %s2003_s18, 256 }
 0x94b   : > { %p2005_p10 = scmp.lt.s32.totalorder %s2501_s15, %s2003_s18  ;;  %p2006_p13 = scmp.lt.s32.totalorder %s2004_s2, %s1998_s20 }
 0x94c   : > { %p2001_p6 = pneg %p2000_p5 }
 0x94d   : > { %p2007_p4 = por %p2006_p13, %p2005_p10 }
 0x94f   : > { %p2008_p7 = pnand %p2007_p4, %p2001_p6 }
 0x9f7   : > { %v1289_v42 = vpop.f32.mrf.mxu1 }
 0x9f8   : > { %v1295_v44 = vadd.f32 %v1289_v42, %v2431_v9 }
 0x9f9   : > { %v1658_v45 = vpop.f32.mrf.mxu1 }
 0x9fa   : > { %v1303_v46 = vadd.f32 %v1537_v43, %v1295_v44 }
 0x9fb   : > { %v1292_v47 = vpop.f32.mrf.mxu1 }
 0x9fc   : > { %1304 = vst.msk [vmem:[%s486_s1] sm:$0xff] %vm502_vm0, %v1303_v46 }
 0x9fd   : > { %v1659_v48 = vpop.f32.mrf.mxu1 }
 0x9fe   : > { %2011 = shalt.err (!%p2008_p7)
}
 0x9ff   : > { %s2012_s19 = scalar_lea.hbm %s2499_s0, 128  ;;  %s2016_s16 = scalar_lea.hbm %s2553_s11, 256 }
 0xa00   : > { %p2013_p8 = scmp.ne.s32.totalorder %s2499_s0, %s2012_s19  ;;  %p2017_p0 = scmp.lt.s32.totalorder %s2499_s0, %s2553_s11 }
 0xa01   : > { %p2018_p1 = scmp.lt.s32.totalorder %s2016_s16, %s2012_s19 }
 0xa02   : > { %p2014_p12 = pnand %p2013_p8, %p2584_p9 }
 0xa03   : > { %p2019_p2 = por %p2018_p1, %p2017_p0 }
 0xa04   : > { %p2015_p11 = pneg %p2014_p12 }
 0xa06   : > { %p2020_p3 = pnand %p2019_p2, %p2015_p11 }
 0xa08   : > { %2023 = shalt.err (!%p2020_p3)
}
 0xa09   : > { %1684 = dma.vmem_to_hbm [thread:$0]  (%p2584_p9), %s2501_s15, 128, %s2499_s0, %s1306_s25  }
 0xa0a PF: > { %p1726_p5 = scmp.ge.s32.totalorder %s2078_s24, 2  ;;  %s1352_s1 = sand.u32 1, %s2066_s21  }
 0xa0b   : > { %p2585_p6 = scmp.ne.s32.totalorder %s2568_s14, 0  ;;  %s1353_s29 = scalar_lea.sflag [#allocation4], %s1352_s1 }
 0xa0d   : > { %p1708_p10 = pnand %p1726_p5, %p2585_p6 }
 0xa0f   : > { %p1709_p13 = pneg %p1708_p10 }
 0xa11   : > { %2057 = dma.done.wait (%p1709_p13), %s1353_s29, 128  }
 0xa12   : > { %2059 = vsyncadd (%p1709_p13), %s1353_s29, 4294967168  ;;  %s1362_s26 = scalar_lea.sflag [#allocation15], %s1352_s1 }
 0xa13   : > { %2061 = dma.done.wait (%p1709_p13), %s1362_s26, 256  }
 0xa14   : > { %2063 = vsyncadd (%p1709_p13), %s1362_s26, 4294967040  ;;  %s2586_s24 = sld [smem:[#allocation23_spill]]  ;;  %s2589_s21 = smov %s2070_s22 }
 0xa15   : > { %s2587_s13 = sld [smem:[#allocation22_spill]] }
 0xa16   : > { %s2588_s23 = sld [smem:[#allocation24_spill]] }
 0xa1a   : > { %p30_p9 = scmp.ge.s32.totalorder %s2586_s24, 4  }
 0xa1b   : > { %s2590_s22 = smov %s2587_s13 }
 0xa1c   :  { %32 = sbr.rel (!%p30_p9) target bundleno = 13 (0xd), region = 141 }
 0xa21   :  { %1367 = vsyncpa [#allocation3], 1 }
 0xa22   :  { %1369 = vsyncpa [#allocation3 + $0x1], 1 }
 0xa23   :  { %1370 = vsyncpa [#allocation6], 1 }
 0xa24   :  { %1371 = vsyncpa [#allocation9], 1 }
 0xa25   :  { %1372 = vsyncpa [#allocation12], 1 }
 0xa26   :  { %1373 = vsyncpa [#allocation4], 1 }
 0xa27   :  { %1375 = vsyncpa [#allocation4 + $0x1], 1 }
 0xa28   :  { %1376 = vsyncpa [#allocation15], 1 }
 0xa29   :  { %1378 = vsyncpa [#allocation15 + $0x1], 1 }

</bundles_post_ra>
